<compile_context>
chip_gen: v6e
topology: v6e:2x2x1
jax: 0.10.0
libtpu: 0.0.40
codegen_flags: <defaults>
</compile_context>

<pallas_src>
import functools

import jax
import jax.numpy as jnp
from jax.experimental import pallas as pl
from jax.experimental.pallas import tpu as pltpu

# ---------------- small synthetic configuration ----------------
B, N = 1, 2                    # batch, num cameras
IN_CHANNELS = 32
OUT_CHANNELS = 16              # C
IMAGE_SIZE = (32, 64)          # (iH, iW)
FEATURE_SIZE = (8, 16)         # (fH, fW)
XBOUND = (-4.0, 4.0, 1.0)      # -> nx = 8
YBOUND = (-4.0, 4.0, 1.0)      # -> ny = 8
ZBOUND = (-5.0, 5.0, 10.0)     # -> nz = 1
DBOUND = (1.0, 5.0, 1.0)       # -> D  = 4
DOWNSAMPLE = 1                 # downsample == 1 -> nn.Identity (the ==2 branch is untouched)


# ---------------- module setup (plain JAX glue) ----------------
def gen_dx_bx(xbound, ybound, zbound):
    dx = jnp.array([row[2] for row in (xbound, ybound, zbound)], jnp.float32)
    bx = jnp.array([row[0] + row[2] / 2.0 for row in (xbound, ybound, zbound)], jnp.float32)
    nx = tuple(int((row[1] - row[0]) / row[2]) for row in (xbound, ybound, zbound))
    return dx, bx, nx


def create_frustum():
    iH, iW = IMAGE_SIZE
    fH, fW = FEATURE_SIZE
    ds = jnp.arange(DBOUND[0], DBOUND[1], DBOUND[2], dtype=jnp.float32)       # (D,)
    D = ds.shape[0]
    xs = jnp.linspace(0.0, iW - 1, fW, dtype=jnp.float32)
    ys = jnp.linspace(0.0, iH - 1, fH, dtype=jnp.float32)
    xs_b = jnp.broadcast_to(xs[None, None, :], (D, fH, fW))
    ys_b = jnp.broadcast_to(ys[None, :, None], (D, fH, fW))
    ds_b = jnp.broadcast_to(ds[:, None, None], (D, fH, fW))
    return jnp.stack([xs_b, ys_b, ds_b], axis=-1)                              # (D, fH, fW, 3)


# ---------------- Pallas kernel 1: fused depthnet + softmax + outer product (all cameras) ----------------
def _cam_feats_kernel(x_ref, wd_ref, bd_ref, wf_ref, bf_ref, o_ref):
    # x_ref: (Cin, Q)  wd: (D, Cin)  bd: (D, 1)  wf: (C, Cin)  bf: (C, 1)  o: (C, D, Q)
    x = x_ref[...]                                                             # (Cin, Q)
    dlog = jnp.dot(wd_ref[...], x, preferred_element_type=jnp.float32) + bd_ref[...]  # (D, Q)
    feat = jnp.dot(wf_ref[...], x, preferred_element_type=jnp.float32) + bf_ref[...]  # (C, Q)
    m = jnp.max(dlog, axis=0, keepdims=True)
    e = jnp.exp(dlog - m)
    depth = e / jnp.sum(e, axis=0, keepdims=True)                              # softmax over D
    # out[c, d, q] = feat[c, q] * depth[d, q]   (lane-dense: Q on lanes, no transpose)
    o_ref[...] = feat[:, None, :] * depth[None, :, :]


def get_cam_feats_pallas(img, w_depth, b_depth, w_feat, b_feat):
    Bb, Nn, Cin, fH, fW = img.shape
    D = w_depth.shape[0]
    C = w_feat.shape[0]
    Q = Bb * Nn * fH * fW                                                      # all cameras fused
    # (Cin, Q) with column q = ((b*N + n)*fH + h)*fW + w  ==  bn*P + p
    x2d = jnp.transpose(img, (2, 0, 1, 3, 4)).reshape(Cin, Q)
    out = pl.pallas_call(
        _cam_feats_kernel,
        out_shape=jax.ShapeDtypeStruct((C, D, Q), jnp.float32),
        grid_spec=pltpu.PrefetchScalarGridSpec(
            num_scalar_prefetch=0,
            grid=(1,),
            in_specs=[
                pl.BlockSpec((Cin, Q), lambda i: (0, 0)),
                pl.BlockSpec((D, Cin), lambda i: (0, 0)),
                pl.BlockSpec((D, 1), lambda i: (0, 0)),
                pl.BlockSpec((C, Cin), lambda i: (0, 0)),
                pl.BlockSpec((C, 1), lambda i: (0, 0)),
            ],
            out_specs=pl.BlockSpec((C, D, Q), lambda i: (0, 0, 0)),
        ),
        compiler_params=pltpu.CompilerParams(dimension_semantics=("arbitrary",)),
    )(x2d, w_depth, b_depth.reshape(D, 1), w_feat, b_feat.reshape(C, 1))
    return out                                                                 # (C, D, Q)


# ---------------- Pallas kernel 2: BEV scatter-add (flipped one-hot matmul accumulator) ----------------
def _bev_scatter_kernel(idx_ref, feat_ref, out_ref, *, ncells):
    @pl.when(pl.program_id(0) == 0)
    def _():
        out_ref[...] = jnp.zeros_like(out_ref)

    idx = idx_ref[...]                                                         # (1, tile) int32, -1 = dropped
    tile = idx.shape[-1]
    cells = jax.lax.broadcasted_iota(jnp.int32, (ncells, tile), 0)             # cell id per row
    onehot = (cells == idx).astype(jnp.float32)                                # (ncells, tile), lane-dense
    # contract over the point tile: (ncells, tile) . (C, tile)^T -> (ncells, C)
    contrib = jax.lax.dot_general(
        onehot, feat_ref[...],
        dimension_numbers=(((1,), (1,)), ((), ())),
        preferred_element_type=jnp.float32,
    )
    out_ref[...] += contrib


def bev_scatter_pallas(flat_idx, feats, ncells, tile=512):
    # flat_idx: (npts,) int32 ; feats: (C, npts) f32 (point axis on lanes)
    C, npts = feats.shape
    tile = min(tile, npts)
    assert npts % tile == 0
    return pl.pallas_call(
        functools.partial(_bev_scatter_kernel, ncells=ncells),
        out_shape=jax.ShapeDtypeStruct((ncells, C), jnp.float32),
        grid_spec=pltpu.PrefetchScalarGridSpec(
            num_scalar_prefetch=0,
            grid=(npts // tile,),
            in_specs=[
                pl.BlockSpec((1, tile), lambda i: (0, i)),                     # lane-dense indices
                pl.BlockSpec((C, tile), lambda i: (0, i)),                     # lane-dense features
            ],
            out_specs=pl.BlockSpec((ncells, C), lambda i: (0, 0)),             # resident accumulator
        ),
        compiler_params=pltpu.CompilerParams(dimension_semantics=("arbitrary",)),
    )(flat_idx.reshape(1, npts), feats)


# ---------------- LSSTransform equivalent ----------------
class LSSTransformJAX:
    def __init__(self, key):
        self.dx, self.bx, self.nx = gen_dx_bx(XBOUND, YBOUND, ZBOUND)
        self.frustum = create_frustum()
        self.D = int(self.frustum.shape[0])
        self.C = OUT_CHANNELS
        k1, k2 = jax.random.split(key)
        # depthnet: nn.Conv2d(in_channels, D + C, kernel_size=1)  -> weight (D+C, C_in), bias (D+C)
        self.w = jax.random.normal(k1, (self.D + self.C, IN_CHANNELS), jnp.float32) * 0.1
        self.b = jax.random.normal(k2, (self.D + self.C,), jnp.float32) * 0.01
        # pre-split (plain JAX, at init) so the kernel never slices across an 8-sublane tile
        self.w_depth = self.w[:self.D]
        self.b_depth = self.b[:self.D]
        self.w_feat = self.w[self.D:]
        self.b_feat = self.b[self.D:]

    # tiny per-camera 3x3 math kept in plain JAX (torch.inverse / matmul glue)
    def get_geometry(self, c2l_rots, c2l_trans, intrins, post_rots, post_trans,
                     extra_rots, extra_trans):
        points = self.frustum[None, None] - post_trans[:, :, None, None, None, :]
        points = jnp.einsum('bnij,bndhwj->bndhwi', jnp.linalg.inv(post_rots), points)
        points = jnp.concatenate(
            [points[..., :2] * points[..., 2:3], points[..., 2:3]], axis=-1)
        combine = jnp.matmul(c2l_rots, jnp.linalg.inv(intrins))
        points = jnp.einsum('bnij,bndhwj->bndhwi', combine, points)
        points = points + c2l_trans[:, :, None, None, None, :]
        points = jnp.einsum('bij,bndhwj->bndhwi', extra_rots, points)
        points = points + extra_trans[:, None, None, None, None, :]
        return points                                                          # (B, N, D, fH, fW, 3)

    def _voxel_indices(self, geom, Bb, nprime):
        nx_, ny_, nz_ = self.nx
        gi = (geom - (self.bx - self.dx / 2.0)) / self.dx
        gi = gi.astype(jnp.int32)                      # truncation toward zero == torch .long()
        gi = gi.reshape(nprime, 3)
        batch_ix = jnp.repeat(jnp.arange(Bb, dtype=jnp.int32), nprime // Bb)
        kept = ((gi[:, 0] >= 0) & (gi[:, 0] < nx_) &
                (gi[:, 1] >= 0) & (gi[:, 1] < ny_) &
                (gi[:, 2] >= 0) & (gi[:, 2] < nz_))
        flat = ((batch_ix * nz_ + gi[:, 2]) * nx_ + gi[:, 0]) * ny_ + gi[:, 1]
        return jnp.where(kept, flat, -1).astype(jnp.int32)

    def bev_pool(self, geom, cam_cdq):
        # cam_cdq: (C, D, Q) from the fused camera-feature kernel, Q = bn*P + p
        Bb, Nn, D, fH, fW, _ = geom.shape
        C = self.C
        nx_, ny_, nz_ = self.nx
        BN, P = Bb * Nn, fH * fW
        nprime = BN * D * P
        # voxel indices in (b, n, d, h, w) order, then re-index to the kernel's (d, bn, p)
        flat = self._voxel_indices(geom, Bb, nprime)                           # (nprime,)
        flat_dbp = jnp.transpose(flat.reshape(BN, D, P), (1, 0, 2)).reshape(nprime)
        feats = cam_cdq.reshape(C, nprime)                                     # same (d, bn, p) order
        ncells = Bb * nz_ * nx_ * ny_
        bev = bev_scatter_pallas(flat_dbp, feats, ncells)                      # (B*nz*nx*ny, C)
        bev = bev.reshape(Bb, nz_, nx_, ny_, C)
        # torch: permute(0,4,1,2,3) then cat(unbind(dim=2), 1)  ==  (B, nz*C, nx, ny), z-major
        bev = jnp.transpose(bev, (0, 1, 4, 2, 3)).reshape(Bb, nz_ * C, nx_, ny_)
        return bev

    def forward(self, img, points, lidar2image, camera_intrinsics, camera2lidar,
                img_aug_matrix, lidar_aug_matrix, metas):
        intrins = camera_intrinsics[..., :3, :3]
        post_rots = img_aug_matrix[..., :3, :3]
        post_trans = img_aug_matrix[..., :3, 3]
        c2l_rots = camera2lidar[..., :3, :3]
        c2l_trans = camera2lidar[..., :3, 3]
        extra_rots = lidar_aug_matrix[..., :3, :3]
        extra_trans = lidar_aug_matrix[..., :3, 3]
        geom = self.get_geometry(c2l_rots, c2l_trans, intrins, post_rots, post_trans,
                                 extra_rots, extra_trans)
        cam = get_cam_feats_pallas(img, self.w_depth, self.b_depth, self.w_feat, self.b_feat)
        x = self.bev_pool(geom, cam)
        # downsample == 1 -> nn.Identity
        return x


# ---------------- plain-JAX reference for verification ----------------
def reference_forward(m, img, camera_intrinsics, camera2lidar, img_aug_matrix, lidar_aug_matrix):
    intrins = camera_intrinsics[..., :3, :3]
    post_rots = img_aug_matrix[..., :3, :3]
    post_trans = img_aug_matrix[..., :3, 3]
    c2l_rots = camera2lidar[..., :3, :3]
    c2l_trans = camera2lidar[..., :3, 3]
    extra_rots = lidar_aug_matrix[..., :3, :3]
    extra_trans = lidar_aug_matrix[..., :3, 3]
    geom = m.get_geometry(c2l_rots, c2l_trans, intrins, post_rots, post_trans,
                          extra_rots, extra_trans)

    Bb, Nn, Cin, fH, fW = img.shape
    P = fH * fW
    x = img.reshape(Bb * Nn, Cin, P)
    logits = jnp.einsum('oc,bcp->bop', m.w, x,
                        precision=jax.lax.Precision.HIGHEST) + m.b[None, :, None]
    depth = jax.nn.softmax(logits[:, :m.D], axis=1)                            # (BN, D, P)
    feat = logits[:, m.D:m.D + m.C]                                            # (BN, C, P)
    cam = depth[:, None, :, :] * feat[:, :, None, :]                           # (BN, C, D, P)
    cam = jnp.transpose(cam, (0, 2, 3, 1)).reshape(Bb, Nn, m.D, fH, fW, m.C)

    nx_, ny_, nz_ = m.nx
    nprime = Bb * Nn * m.D * fH * fW
    feats = cam.reshape(nprime, m.C)
    flat = m._voxel_indices(geom, Bb, nprime)
    ncells = Bb * nz_ * nx_ * ny_
    safe = jnp.where(flat < 0, ncells, flat)                                   # OOB -> dropped
    bev = jnp.zeros((ncells, m.C), jnp.float32).at[safe].add(feats, mode='drop')
    bev = bev.reshape(Bb, nz_, nx_, ny_, m.C)
    return jnp.transpose(bev, (0, 1, 4, 2, 3)).reshape(Bb, nz_ * m.C, nx_, ny_)


# ---------------- main ----------------
if __name__ == "__main__":
    key = jax.random.PRNGKey(0)
    k_img, k_param = jax.random.split(key)

    module = LSSTransformJAX(k_param)

    fH, fW = FEATURE_SIZE
    iH, iW = IMAGE_SIZE
    img = jax.random.normal(k_img, (B, N, IN_CHANNELS, fH, fW), jnp.float32)

    # deterministic camera/aug matrices
    K = jnp.array([[16.0, 0.0, iW / 2.0, 0.0],
                   [0.0, 16.0, iH / 2.0, 0.0],
                   [0.0, 0.0, 1.0, 0.0],
                   [0.0, 0.0, 0.0, 1.0]], jnp.float32)
    camera_intrinsics = jnp.broadcast_to(K, (B, N, 4, 4))

    eye4 = jnp.eye(4, dtype=jnp.float32)
    img_aug = eye4.at[:3, 3].set(jnp.array([0.5, -0.5, 0.0], jnp.float32))
    img_aug_matrix = jnp.broadcast_to(img_aug, (B, N, 4, 4))

    c2l = eye4.at[:3, 3].set(jnp.array([0.2, 0.1, -0.1], jnp.float32))
    camera2lidar = jnp.broadcast_to(c2l, (B, N, 4, 4))

    lidar_aug_matrix = jnp.broadcast_to(eye4, (B, 4, 4))
    lidar2image = jnp.broadcast_to(eye4, (B, N, 4, 4))   # unused by the LSS path
    points, metas = None, None

    out = module.forward(img, points, lidar2image, camera_intrinsics, camera2lidar,
                         img_aug_matrix, lidar_aug_matrix, metas)
    out = jax.block_until_ready(out)

    ref = reference_forward(module, img, camera_intrinsics, camera2lidar,
                            img_aug_matrix, lidar_aug_matrix)
    ref = jax.block_until_ready(ref)

    assert out.shape == (B, OUT_CHANNELS * module.nx[2], module.nx[0], module.nx[1]), out.shape
    assert jnp.allclose(out, ref, rtol=1e-2, atol=1e-3), \
        f"max abs err = {float(jnp.max(jnp.abs(out - ref)))}"

    print("KERNEL_OK")
</pallas_src>

<mosaic_0001>
module attributes {stable_mosaic.version = 11 : i64} {
  func.func @_cam_feats_kernel(%arg0: i32, %arg1: memref<32x256xf32, #tpu.memory_space<vmem>>, %arg2: memref<4x32xf32, #tpu.memory_space<vmem>>, %arg3: memref<4x1xf32, #tpu.memory_space<vmem>>, %arg4: memref<16x32xf32, #tpu.memory_space<vmem>>, %arg5: memref<16x1xf32, #tpu.memory_space<vmem>>, %arg6: memref<16x4x256xf32, #tpu.memory_space<vmem>>) attributes {dimension_semantics = [#tpu.dimension_semantics<arbitrary>], iteration_bounds = array<i64: 1>, scalar_prefetch = 0 : i64, scratch_operands = 0 : i64, tpu.core_type = #tpu.core_type<tc>, window_params = [{pipeline_mode = #tpu.pipeline_mode<synchronous>, transform_indices = @transform_0, window_bounds = array<i64: 32, 256>}, {pipeline_mode = #tpu.pipeline_mode<synchronous>, transform_indices = @transform_1, window_bounds = array<i64: 4, 32>}, {pipeline_mode = #tpu.pipeline_mode<synchronous>, transform_indices = @transform_2, window_bounds = array<i64: 4, 1>}, {pipeline_mode = #tpu.pipeline_mode<synchronous>, transform_indices = @transform_3, window_bounds = array<i64: 16, 32>}, {pipeline_mode = #tpu.pipeline_mode<synchronous>, transform_indices = @transform_4, window_bounds = array<i64: 16, 1>}, {pipeline_mode = #tpu.pipeline_mode<synchronous>, transform_indices = @transform_5, window_bounds = array<i64: 16, 4, 256>}]} {
    %c0 = arith.constant 0 : index
    %c0_0 = arith.constant 0 : index
    %0 = vector.load %arg1[%c0, %c0_0] : memref<32x256xf32, #tpu.memory_space<vmem>>, vector<32x256xf32>
    %c0_1 = arith.constant 0 : index
    %c0_2 = arith.constant 0 : index
    %1 = vector.load %arg2[%c0_1, %c0_2] : memref<4x32xf32, #tpu.memory_space<vmem>>, vector<4x32xf32>
    %cst = arith.constant dense<0.000000e+00> : vector<4x256xf32>
    %2 = tpu.matmul %1, %0, %cst {dimension_numbers = #tpu.dot_dimension_numbers<[1], [0], [0], [1], [0, 0, 1, 1], [], []>} : vector<4x32xf32>, vector<32x256xf32>, vector<4x256xf32> -> vector<4x256xf32>
    %c0_3 = arith.constant 0 : index
    %c0_4 = arith.constant 0 : index
    %3 = vector.load %arg3[%c0_3, %c0_4] : memref<4x1xf32, #tpu.memory_space<vmem>>, vector<4x1xf32>
    %4 = vector.broadcast %3 : vector<4x1xf32> to vector<4x256xf32>
    %5 = arith.addf %2, %4 : vector<4x256xf32>
    %c0_5 = arith.constant 0 : index
    %c0_6 = arith.constant 0 : index
    %6 = vector.load %arg4[%c0_5, %c0_6] : memref<16x32xf32, #tpu.memory_space<vmem>>, vector<16x32xf32>
    %cst_7 = arith.constant dense<0.000000e+00> : vector<16x256xf32>
    %7 = tpu.matmul %6, %0, %cst_7 {dimension_numbers = #tpu.dot_dimension_numbers<[1], [0], [0], [1], [0, 0, 1, 1], [], []>} : vector<16x32xf32>, vector<32x256xf32>, vector<16x256xf32> -> vector<16x256xf32>
    %c0_8 = arith.constant 0 : index
    %c0_9 = arith.constant 0 : index
    %8 = vector.load %arg5[%c0_8, %c0_9] : memref<16x1xf32, #tpu.memory_space<vmem>>, vector<16x1xf32>
    %9 = vector.broadcast %8 : vector<16x1xf32> to vector<16x256xf32>
    %10 = arith.addf %7, %9 : vector<16x256xf32>
    %cst_10 = arith.constant dense<0xFF800000> : vector<256xf32>
    %11 = vector.multi_reduction <maximumf>, %5, %cst_10 [0] : vector<4x256xf32> to vector<256xf32>
    %12 = vector.shape_cast %11 : vector<256xf32> to vector<1x256xf32>
    %13 = vector.broadcast %12 : vector<1x256xf32> to vector<4x256xf32>
    %14 = arith.subf %5, %13 : vector<4x256xf32>
    %15 = math.exp %14 : vector<4x256xf32>
    %cst_11 = arith.constant dense<0.000000e+00> : vector<256xf32>
    %16 = vector.multi_reduction <add>, %15, %cst_11 [0] : vector<4x256xf32> to vector<256xf32>
    %17 = vector.shape_cast %16 : vector<256xf32> to vector<1x256xf32>
    %18 = vector.broadcast %17 : vector<1x256xf32> to vector<4x256xf32>
    %19 = arith.divf %15, %18 : vector<4x256xf32>
    %20 = vector.shape_cast %10 : vector<16x256xf32> to vector<16x1x256xf32>
    %21 = vector.shape_cast %19 : vector<4x256xf32> to vector<1x4x256xf32>
    %22 = vector.broadcast %20 : vector<16x1x256xf32> to vector<16x4x256xf32>
    %23 = vector.broadcast %21 : vector<1x4x256xf32> to vector<16x4x256xf32>
    %24 = arith.mulf %22, %23 : vector<16x4x256xf32>
    %c0_12 = arith.constant 0 : index
    %c0_13 = arith.constant 0 : index
    %c0_14 = arith.constant 0 : index
    %25 = vector.load %arg6[%c0_12, %c0_13, %c0_14] : memref<16x4x256xf32, #tpu.memory_space<vmem>>, vector<16x4x256xf32>
    tpu.vector_store %arg6[%c0_12, %c0_13, %c0_14], %24 {strides = array<i32>} : memref<16x4x256xf32, #tpu.memory_space<vmem>>, vector<16x4x256xf32>,
    return
  }
  func.func @transform_0(%arg0: i32) -> (i32, i32) {
    %c0_i32 = arith.constant 0 : i32
    %c0_i32_0 = arith.constant 0 : i32
    %c0_i32_1 = arith.constant 0 : i32
    return %c0_i32, %c0_i32_0 : i32, i32
  }
  func.func @transform_1(%arg0: i32) -> (i32, i32) {
    %c0_i32 = arith.constant 0 : i32
    %c0_i32_0 = arith.constant 0 : i32
    %c0_i32_1 = arith.constant 0 : i32
    return %c0_i32, %c0_i32_0 : i32, i32
  }
  func.func @transform_2(%arg0: i32) -> (i32, i32) {
    %c0_i32 = arith.constant 0 : i32
    %c0_i32_0 = arith.constant 0 : i32
    %c0_i32_1 = arith.constant 0 : i32
    return %c0_i32, %c0_i32_0 : i32, i32
  }
  func.func @transform_3(%arg0: i32) -> (i32, i32) {
    %c0_i32 = arith.constant 0 : i32
    %c0_i32_0 = arith.constant 0 : i32
    %c0_i32_1 = arith.constant 0 : i32
    return %c0_i32, %c0_i32_0 : i32, i32
  }
  func.func @transform_4(%arg0: i32) -> (i32, i32) {
    %c0_i32 = arith.constant 0 : i32
    %c0_i32_0 = arith.constant 0 : i32
    %c0_i32_1 = arith.constant 0 : i32
    return %c0_i32, %c0_i32_0 : i32, i32
  }
  func.func @transform_5(%arg0: i32) -> (i32, i32, i32) {
    %c0_i32 = arith.constant 0 : i32
    %c0_i32_0 = arith.constant 0 : i32
    %c0_i32_1 = arith.constant 0 : i32
    %c0_i32_2 = arith.constant 0 : i32
    return %c0_i32, %c0_i32_0, %c0_i32_1 : i32, i32, i32
  }
}

</mosaic_0001>

<bundles_post_ra>
// kernel: tpu_custom_call.1
= control target key start
LH: loop header
LB: loop body
LE: loop exit
PB: predicated region body
PF: predicated region fallthrough
CT: control target
= control target key end

     0   :  { %10 = vsyncpa [#allocation3], 0  ;;  %s895_s0 = inlined_call_operand.hbm [shape: f32[32,256], index: 0, kind: input, shape index: {}]   ;;  %s896_s1 = inlined_call_operand.vmem [shape: f32[4,32], index: 1, kind: input, shape index: {}]   ;;  %s897_s2 = inlined_call_operand.vmem [shape: f32[4,1], index: 2, kind: input, shape index: {}]   ;;  %s898_s3 = inlined_call_operand.vmem [shape: f32[16,32], index: 3, kind: input, shape index: {}]   ;;  %s899_s4 = inlined_call_operand.vmem [shape: f32[16,1], index: 4, kind: input, shape index: {}]   ;;  %s900_s5 = inlined_call_operand.hbm [shape: f32[16,4,256], index: 5, kind: output, shape index: {}]  }
   0x1   :  { %11 = vsyncpa [#allocation4], 0  ;;  %s720_s18 = smov [#allocation2]  }
   0x2   :  { %s17_s19 = sshll.u32 %s720_s18, 4  ;;  %s18_s19 = int_to_ptr.vmem [resolvable:$true] %s17_s19 }
   0x3   :  { %s684_s20 = scalar_lea.vmem %s18_s19, 1024  ;;  %p689_p1 = scmp.lt.s32.totalorder %s18_s19, %s18_s19 }
   0x4   :  { %p685_p0 = scmp.ne.s32.totalorder %s18_s19, %s684_s20  ;;  %p690_p2 = scmp.lt.s32.totalorder %s684_s20, %s684_s20 }
   0x6   :  { %p691_p3 = por %p690_p2, %p689_p1 }
   0x8   :  { %p692_p4 = pnand %p691_p3, %p685_p0 }
   0xa   :  { %695 = shalt.err (!%p692_p4)
}
   0xb   :  { %s721_s21 = smov 256   ;;  %s722_s22 = smov 16  }
   0xc   :  { %23 = dma.hbm_to_vmem [thread:$0]  %s895_s0, 1024, %s18_s19, [#allocation3], %s721_s21, %s721_s21, %s722_s22  }
   0xd   :  { %716 = dma.done.wait [#allocation3], 1024  }
   0xe   :  { %717 = vsyncadd [#allocation3], 4294966272  ;;  %v723_v0 = vmov 0.0   ;;  %v724_v1 = vmov 0   ;;  %v42_v2 = vld [vmem:[#allocation2 + $0x38] sm:$0xff]  ;;  %v41_v3 = vld [vmem:[#allocation2 + $0x30] sm:$0xff]  ;;  %v270_v43 = vlaneseq }
   0xf   :  { %118 = vmatprep.mubr.f32.mxu0 %v723_v0  ;;  %209 = vmatprep.mubr.f32.mxu1 %v723_v0  ;;  %v40_v4 = vld [vmem:[#allocation2 + $0x28] sm:$0xff]  ;;  %v39_v5 = vld [vmem:[#allocation2 + $0x20] sm:$0xff]  ;;  %v38_v6 = vld [vmem:[#allocation2 + $0x18] sm:$0xff]  ;;  %vm50_vm0 = vcmask 261120   ;;  %vm222_vm1 = vcmask 1043456  }
  0x10   :  { %666 = vset.pattern.permute.xlu0 %v724_v1  ;;  %667 = vset.pattern.permute.xlu1 %v724_v1  ;;  %v37_v7 = vld [vmem:[#allocation2 + $0x10] sm:$0xff]  ;;  %v36_v8 = vld [vmem:[#allocation2 + $0x8] sm:$0xff]  ;;  %v35_v9 = vld [vmem:[#allocation2] sm:$0xff]  ;;  %v725_v41 = vmov 1966171168   ;;  %v271_v49 = vshrl.u32 %v270_v43, 7 }
  0x11   :  { %78 = vmatprep.subr.mxu0 %v42_v2  ;;  %169 = vmatprep.subr.mxu1 %v42_v2  ;;  %v43_v10 = vld [vmem:[%s896_s1] sm:$0xf]  ;;  %v128_v13 = vld [vmem:[%s899_s4 + $0x8] sm:$0xff]  ;;  %v268_v42 = vunpack.c.l.s4 %v725_v41 }
  0x12   :  { %79 = vmatpush1.msra.mxu0 %v41_v3  ;;  %170 = vmatpush1.msra.mxu1 %v41_v3  ;;  %v125_v11 = vld [vmem:[%s898_s3] sm:$0xff]  ;;  %v126_v14 = vld [vmem:[%s898_s3 + $0x8] sm:$0xff] }
  0x13   :  { %80 = vmatprep.subr.mxu0 %v40_v4  ;;  %171 = vmatprep.subr.mxu1 %v40_v4  ;;  %v44_v12 = vld [vmem:[%s897_s2] sm:$0xf]  ;;  %v269_v48 = vunpack.c.0.s8 %v268_v42  ;;  %s726_s2 = smov [#allocation5]  }
  0x14   :  { %81 = vmatpush1.msra.mxu0 %v39_v5  ;;  %172 = vmatpush1.msra.mxu1 %v39_v5  ;;  %v127_v15 = vld [vmem:[%s899_s4] sm:$0xff]  ;;  %s642_s3 = sshll.u32 %s726_s2, 4  ;;  %s643_s3 = int_to_ptr.vmem [resolvable:$true] %s642_s3 }
  0x15   :  { %82 = vmatprep.subr.mxu0 %v38_v6  ;;  %173 = vmatprep.subr.mxu1 %v38_v6  ;;  %v272_v57 = vsub.s32 %v269_v48, %v271_v49  ;;  %s696_s4 = scalar_lea.vmem %s643_s3, 2048  ;;  %p701_p6 = scmp.lt.s32.totalorder %s643_s3, %s643_s3 }
  0x16   :  { %83 = vmatpush1.msra.mxu0 %v37_v7  ;;  %174 = vmatpush1.msra.mxu1 %v37_v7  ;;  %p697_p5 = scmp.ne.s32.totalorder %s643_s3, %s696_s4  ;;  %p702_p7 = scmp.lt.s32.totalorder %s696_s4, %s696_s4 }
  0x17   :  { %84 = vmatprep.subr.mxu0 %v36_v8  ;;  %175 = vmatprep.subr.mxu1 %v36_v8 }
  0x18   :  { %85 = vmatpush1.msra.mxu0 %v35_v9  ;;  %176 = vmatpush1.msra.mxu1 %v35_v9  ;;  %p703_p8 = por %p702_p7, %p701_p6 }
  0x19   :  { %654 = vmatmul.mubr.msk.f32.vlgmr.msra.gmra.mxu0 %vm50_vm0, %v43_v10  ;;  %655 = vmatmul.mubr.msk.f32.vlgmr.msra.gmra.mxu1 %vm50_vm0, %v125_v11 }
  0x1a   :  { %215 = vmatprep.mubr.f32.mxu1 %v723_v0  ;;  %47 = vperm.xlu0 %666, %v44_v12   ;;  %p704_p9 = pnand %p703_p8, %p697_p5 }
  0x1b   :  { %136 = vperm.xlu1 %667, %v128_v13  }
  0x1d   :  { %656 = vmatmul.mubr.msk.f32.gmra.mxu1 %vm50_vm0, %v126_v14 }
  0x1e   :  { %131 = vperm.xlu0 %666, %v127_v15  }
  0x95   :  { %v48_v16 = vpop.permute.xlu0 %47 }
  0x96   :  { %v137_v51 = vpop.permute.xlu1 %136 }
  0x99   :  { %v132_v44 = vpop.permute.xlu0 %131 }
  0xd9   :  { %v120_v17 = vpop.f32.mrf.mxu0  ;;  %v211_v39 = vpop.f32.mrf.mxu1 }
  0xda   :  { %v121_v18 = vadd.f32 %v120_v17, %v48_v16  ;;  %v212_v46 = vadd.f32 %v211_v39, %v132_v44 }
  0xdb   :  { %v122_v19 = vpop.f32.mrf.mxu0  ;;  %v213_v40 = vpop.f32.mrf.mxu1 }
  0xdc   :  { %v223_v20 = vsel %vm222_vm1, %v121_v18, -inf  ;;  %v123_v21 = vadd.f32 %v122_v19, %v48_v16  ;;  %v214_v47 = vadd.f32 %v213_v40, %v132_v44 }
  0xdd   :  { %v224_v22 = vrot.slane %v223_v20, 4  ;;  %v217_v45 = vpop.f32.mrf.mxu1 }
  0xde   :  { %v230_v23 = vsel %vm222_vm1, %v123_v21, -inf  ;;  %v265_v56 = vcombine.low %v212_v46, %v214_v47  ;;  %v218_v59 = vadd.f32 %v217_v45, %v137_v51  ;;  %v266_v63 = vcombine.high %v212_v46, %v214_v47 }
  0xdf   :  { %v225_v24 = vmax.f32 %v223_v20, %v224_v22  ;;  %v231_v25 = vrot.slane %v230_v23, 4  ;;  %v219_v52 = vpop.f32.mrf.mxu1  ;;  %v798_v22 = vsub.s32 0, %v271_v49 }
  0xe0   :  { %v220_v60 = vadd.f32 %v219_v52, %v137_v51  ;;  %v273_v2 = vrot.slane %v265_v56, %v272_v57  ;;  %v280_v6 = vrot.slane %v266_v63, %v272_v57 }
  0xe1   :  { %v226_v26 = vrot.slane %v225_v24, 2  ;;  %v232_v27 = vmax.f32 %v230_v23, %v231_v25  ;;  %v800_v23 = vsub.s32 1, %v271_v49 }
  0xe2   :  { %v315_v3 = vcombine.low %v218_v59, %v220_v60  ;;  %v316_v7 = vcombine.high %v218_v59, %v220_v60  ;;  %v281_v10 = vcombine.high %v273_v2, %v273_v2  ;;  %v282_v14 = vcombine.high %v280_v6, %v280_v6 }
  0xe3   :  { %v227_v28 = vmax.f32 %v225_v24, %v226_v26  ;;  %v233_v29 = vrot.slane %v232_v27, 2  ;;  %v790_v15 = vrot.slane %v273_v2, %v272_v57  ;;  %v794_v19 = vrot.slane %v280_v6, %v272_v57 }
  0xe4   :  { %v323_v11 = vrot.slane %v315_v3, %v272_v57  ;;  %v330_v16 = vrot.slane %v316_v7, %v272_v57 }
  0xe5   :  { %v228_v30 = vrot.slane %v227_v28, 1  ;;  %v234_v31 = vmax.f32 %v232_v27, %v233_v29  ;;  %v311_v24 = vcombine.high %v790_v15, %v790_v15  ;;  %v400_v42 = vrot.slane %v794_v19, %v798_v22 }
  0xe6   :  { %v331_v20 = vcombine.high %v323_v11, %v323_v11  ;;  %v332_v25 = vcombine.high %v330_v16, %v330_v16  ;;  %v806_v27 = vrot.slane %v323_v11, %v272_v57  ;;  %v404_v43 = vrot.slane %v794_v19, %v800_v23 }
  0xe7   :  { %v229_v32 = vmax.f32 %v227_v28, %v228_v30  ;;  %v235_v33 = vrot.slane %v234_v31, 1  ;;  %v312_v28 = vcombine.high %v794_v19, %v794_v19 }
  0xe8   :  { %v810_v29 = vrot.slane %v331_v20, %v272_v57  ;;  %v832_v41 = vcombine.high %v806_v27, %v806_v27  ;;  %v436_v56 = vrot.slane %v806_v27, %v800_v23 }
  0xe9   :  { %v237_v34 = vsub.f32 %v121_v18, %v229_v32  ;;  %v236_v35 = vmax.f32 %v234_v31, %v235_v33  ;;  %v792_v18 = vrot.slane %v281_v10, %v272_v57  ;;  %v368_v31 = vrot.slane %v790_v15, %v798_v22 }
  0xea   :  { %v372_v32 = vrot.slane %v790_v15, %v800_v23  ;;  %v842_v45 = vcombine.high %v810_v29, %v810_v29  ;;  %v416_v47 = vrot.slane %v312_v28, %v798_v22  ;;  %v420_v48 = vrot.slane %v312_v28, %v800_v23 }
  0xeb   :  { %v239_v36 = vmul.f32 1.442695, %v237_v34  ;;  %v238_v37 = vsub.f32 %v123_v21, %v236_v35  ;;  %v796_v21 = vrot.slane %v282_v14, %v272_v57  ;;  %v313_v26 = vcombine.high %v792_v18, %v792_v18 }
  0xec   :  { %v376_v33 = vrot.slane %v792_v18, %v798_v22  ;;  %v380_v34 = vrot.slane %v792_v18, %v800_v23  ;;  %v384_v35 = vrot.slane %v311_v24, %v798_v22  ;;  %v448_v59 = vrot.slane %v832_v41, %v798_v22 }
  0xed   :  { %668 = vpow2.f32 %v239_v36  ;;  %v241_v38 = vmul.f32 1.442695, %v238_v37  ;;  %v314_v30 = vcombine.high %v796_v21, %v796_v21  ;;  %v823_v36 = vrot.slane %v330_v16, %v272_v57 }
  0xee   :  { %v825_v37 = vrot.slane %v332_v25, %v272_v57  ;;  %v392_v39 = vrot.slane %v313_v26, %v798_v22  ;;  %v396_v40 = vrot.slane %v313_v26, %v800_v23  ;;  %v408_v44 = vrot.slane %v796_v21, %v798_v22 }
  0xef   :  { %670 = vpow2.f32 %v241_v38  ;;  %v388_v38 = vrot.slane %v311_v24, %v800_v23  ;;  %v412_v46 = vrot.slane %v796_v21, %v800_v23  ;;  %v424_v49 = vrot.slane %v314_v30, %v798_v22 }
  0xf0   :  { %v428_v51 = vrot.slane %v314_v30, %v800_v23  ;;  %v852_v52 = vcombine.high %v823_v36, %v823_v36  ;;  %v440_v57 = vrot.slane %v810_v29, %v798_v22  ;;  %v464_v63 = vrot.slane %v823_v36, %v798_v22 }
  0xf1   :  { %v460_v2 = vrot.slane %v842_v45, %v800_v23  ;;  %v472_v3 = vrot.slane %v825_v37, %v798_v22 }
  0xf2   :  { %v480_v6 = vrot.slane %v852_v52, %v798_v22  ;;  %v484_v7 = vrot.slane %v852_v52, %v800_v23 }
  0xfa   :  { %v782_v50 = vpop.eup %668 }
  0xfb   :  { %v243_v53 = vsel %vm222_vm1, %v782_v50, 0.0 }
  0xfc   :  { %v786_v54 = vpop.eup %670  ;;  %v244_v55 = vrot.slane %v243_v53, 4 }
  0xfd   :  { %v250_v58 = vsel %vm222_vm1, %v786_v54, 0.0 }
  0xfe   :  { %v245_v61 = vadd.f32 %v244_v55, %v243_v53  ;;  %v251_v62 = vrot.slane %v250_v58, 4  ;;  %v856_v53 = vcombine.high %v825_v37, %v825_v37  ;;  %v432_v55 = vrot.slane %v806_v27, %v798_v22 }
 0x100   :  { %v246_v0 = vrot.slane %v245_v61, 2  ;;  %v252_v1 = vadd.f32 %v251_v62, %v250_v58  ;;  %v444_v58 = vrot.slane %v810_v29, %v800_v23  ;;  %v456_v62 = vrot.slane %v842_v45, %v798_v22 }
 0x102   :  { %v247_v4 = vadd.f32 %v246_v0, %v245_v61  ;;  %v253_v5 = vrot.slane %v252_v1, 2  ;;  %v452_v61 = vrot.slane %v832_v41, %v800_v23  ;;  %v468_v0 = vrot.slane %v823_v36, %v800_v23 }
 0x104   :  { %v248_v8 = vrot.slane %v247_v4, 1  ;;  %v254_v9 = vadd.f32 %v253_v5, %v252_v1 }
 0x106   :  { %v249_v12 = vadd.f32 %v248_v8, %v247_v4  ;;  %v255_v13 = vrot.slane %v254_v9, 1  ;;  %v476_v4 = vrot.slane %v825_v37, %v800_v23  ;;  %v488_v8 = vrot.slane %v856_v53, %v798_v22 }
 0x108   :  { %672 = vrcp.f32 %v249_v12  ;;  %v256_v17 = vadd.f32 %v255_v13, %v254_v9 }
 0x10a   :  { %674 = vrcp.f32 %v256_v17 }
 0x115   :  { %v673_v60 = vpop.eup %672 }
 0x116   :  { %v258_v1 = vmul.f32 %v673_v60, %v782_v50  ;;  %v492_v50 = vrot.slane %v856_v53, %v800_v23 }
 0x117   :  { %v675_v5 = vpop.eup %674 }
 0x118   :  { %v260_v9 = vmul.f32 %v675_v5, %v786_v54  ;;  %v525_v10 = vmul.f32 %v368_v31, %v258_v1  ;;  %v527_v11 = vmul.f32 %v376_v33, %v258_v1  ;;  %v529_v12 = vmul.f32 %v384_v35, %v258_v1 }
 0x119   :  { %v531_v13 = vmul.f32 %v392_v39, %v258_v1  ;;  %v533_v14 = vmul.f32 %v400_v42, %v258_v1  ;;  %v535_v15 = vmul.f32 %v408_v44, %v258_v1  ;;  %v537_v16 = vmul.f32 %v416_v47, %v258_v1 }
 0x11a   :  { %v526_v17 = vmul.f32 %v372_v32, %v260_v9  ;;  %v528_v18 = vmul.f32 %v380_v34, %v260_v9  ;;  %v530_v19 = vmul.f32 %v388_v38, %v260_v9  ;;  %v532_v20 = vmul.f32 %v396_v40, %v260_v9 }
 0x11b   :  { %v534_v21 = vmul.f32 %v404_v43, %v260_v9  ;;  %v536_v24 = vmul.f32 %v412_v46, %v260_v9  ;;  %v538_v25 = vmul.f32 %v420_v48, %v260_v9  ;;  %v539_v22 = vmul.f32 %v424_v49, %v258_v1 }
 0x11c   :  { %v540_v26 = vmul.f32 %v428_v51, %v260_v9  ;;  %v589_v27 = vcombine.low %v525_v10, %v526_v17  ;;  %v590_v23 = vcombine.low %v527_v11, %v528_v18  ;;  %v591_v28 = vcombine.low %v529_v12, %v530_v19 }
 0x11d   :  { %v592_v54 = vcombine.low %v531_v13, %v532_v20  ;;  %v593_v29 = vcombine.low %v533_v14, %v534_v21  ;;  %v594_v30 = vcombine.low %v535_v15, %v536_v24  ;;  %v595_v31 = vcombine.low %v537_v16, %v538_v25 }
 0x11e   :  { %v596_v33 = vcombine.low %v539_v22, %v540_v26  ;;  %621 = vst [vmem:[#allocation5] sm:$0xff] %v589_v27  ;;  %622 = vst [vmem:[#allocation5 + $0x8] sm:$0xff] %v590_v23  ;;  %v541_v32 = vmul.f32 %v432_v55, %v258_v1  ;;  %v542_v34 = vmul.f32 %v436_v56, %v260_v9 }
 0x11f   :  { %623 = vst [vmem:[#allocation5 + $0x10] sm:$0xff] %v591_v28  ;;  %v543_v35 = vmul.f32 %v440_v57, %v258_v1  ;;  %624 = vst [vmem:[#allocation5 + $0x18] sm:$0xff] %v592_v54  ;;  %v544_v36 = vmul.f32 %v444_v58, %v260_v9  ;;  %v545_v37 = vmul.f32 %v448_v59, %v258_v1 }
 0x120   :  { %625 = vst [vmem:[#allocation5 + $0x20] sm:$0xff] %v593_v29  ;;  %626 = vst [vmem:[#allocation5 + $0x28] sm:$0xff] %v594_v30  ;;  %v546_v38 = vmul.f32 %v452_v61, %v260_v9  ;;  %v547_v39 = vmul.f32 %v456_v62, %v258_v1  ;;  %v548_v40 = vmul.f32 %v460_v2, %v260_v9 }
 0x121   :  { %627 = vst [vmem:[#allocation5 + $0x30] sm:$0xff] %v595_v31  ;;  %628 = vst [vmem:[#allocation5 + $0x38] sm:$0xff] %v596_v33  ;;  %v549_v41 = vmul.f32 %v464_v63, %v258_v1  ;;  %v550_v42 = vmul.f32 %v468_v0, %v260_v9  ;;  %v551_v43 = vmul.f32 %v472_v3, %v258_v1 }
 0x122   :  { %v552_v44 = vmul.f32 %v476_v4, %v260_v9  ;;  %v553_v45 = vmul.f32 %v480_v6, %v258_v1  ;;  %v554_v46 = vmul.f32 %v484_v7, %v260_v9  ;;  %v555_v47 = vmul.f32 %v488_v8, %v258_v1 }
 0x123   :  { %v556_v48 = vmul.f32 %v492_v50, %v260_v9  ;;  %v597_v49 = vcombine.low %v541_v32, %v542_v34  ;;  %v598_v51 = vcombine.low %v543_v35, %v544_v36  ;;  %v599_v52 = vcombine.low %v545_v37, %v546_v38 }
 0x124   :  { %v600_v53 = vcombine.low %v547_v39, %v548_v40  ;;  %v601_v55 = vcombine.low %v549_v41, %v550_v42  ;;  %v602_v56 = vcombine.low %v551_v43, %v552_v44  ;;  %v603_v57 = vcombine.low %v553_v45, %v554_v46 }
 0x125   :  { %v604_v58 = vcombine.low %v555_v47, %v556_v48  ;;  %629 = vst [vmem:[#allocation5 + $0x40] sm:$0xff] %v597_v49  ;;  %630 = vst [vmem:[#allocation5 + $0x48] sm:$0xff] %v598_v51 }
 0x126   :  { %631 = vst [vmem:[#allocation5 + $0x50] sm:$0xff] %v599_v52  ;;  %632 = vst [vmem:[#allocation5 + $0x58] sm:$0xff] %v600_v53 }
 0x127   :  { %633 = vst [vmem:[#allocation5 + $0x60] sm:$0xff] %v601_v55  ;;  %634 = vst [vmem:[#allocation5 + $0x68] sm:$0xff] %v602_v56 }
 0x128   :  { %635 = vst [vmem:[#allocation5 + $0x70] sm:$0xff] %v603_v57  ;;  %636 = vst [vmem:[#allocation5 + $0x78] sm:$0xff] %v604_v58 }
 0x129   :  { %707 = shalt.err (!%p704_p9)
}
 0x12a   :  { %s727_s10 = smov 128   ;;  %s728_s11 = smov 8  }
 0x12b   :  { %648 = dma.vmem_to_hbm [thread:$0]  %s643_s3, 2048, %s900_s5, [#allocation4], %s727_s10, %s727_s10, %s728_s11  }
 0x12c   :  { %718 = dma.done.wait [#allocation4], 2048  }
 0x12d   :  { %719 = vsyncadd [#allocation4], 4294965248 }
 0x12e   :  { %652 = vsyncpa [#allocation3], 1 }
 0x12f   :  { %653 = vsyncpa [#allocation4], 1 }

</bundles_post_ra>
